<compile_context>
chip_gen: v5e
topology: v5e:2x2
jax: 0.10.0
libtpu: 0.0.40
codegen_flags: <defaults>
</compile_context>

<pallas_src>
import functools

import jax
import jax.numpy as jnp
from jax import lax
from jax.experimental import pallas as pl
from jax.experimental.pallas import tpu as pltpu


def _round_up(n, m):
    return ((n + m - 1) // m) * m


def _pick_time_chunk(T, max_chunk=8):
    """Largest divisor of T that is <= max_chunk (amortizes grid-step overhead)."""
    for ct in range(min(T, max_chunk), 0, -1):
        if T % ct == 0:
            return ct
    return 1


def _pick_batch_block(Bp):
    """Bp is a multiple of 8. Prefer >=2 batch blocks (of <=128 rows) so the
    'parallel' batch grid axis can be split across TensorCores on v7x."""
    if Bp < 16:
        return Bp
    if Bp == 16:
        return 8
    bb = min(128, _round_up(Bp // 2, 8))
    while Bp % bb:
        bb -= 8
    return bb


def _rnn_classifier_kernel(x_ref, wih_ref, whh_ref, b_ref, wfc_ref, bfc_ref,
                           out_ref, h_ref, *, CT, D):
    """Grid = (batch_blocks, time_chunks); time is the inner 'arbitrary' axis.

    x_ref   : (BB, CT*D)  bf16  current batch block, CT consecutive timesteps
    wih_ref : (D, Hp)     bf16  = W_ih.T, zero-padded to Hp columns
    whh_ref : (Hp, Hp)    f32   = W_hh.T, zero-padded
    b_ref   : (1, Hp)     f32   = b_ih + b_hh, zero-padded
    wfc_ref : (Hp, Op)    f32   = W_fc.T, zero-padded rows/cols
    bfc_ref : (1, Op)     f32   = b_fc, padded columns filled with -1e30
    out_ref : (BB, Op)    f32   log-probabilities (valid region [:B, :O])
    h_ref   : (BB, Hp)    f32   hidden-state scratch, resident across time steps
    """
    t = pl.program_id(1)

    @pl.when(t == 0)
    def _init():
        h_ref[...] = jnp.zeros_like(h_ref)

    wih = wih_ref[...]
    whh = whh_ref[...]
    h = h_ref[...]
    bias = jnp.broadcast_to(b_ref[...], h.shape)   # hoisted out of the loop

    # CT <= 8 static timesteps per grid step.  The recurrence is a serial
    # dependency chain, so only one (BB, Hp) value is live; long T is chunked
    # over the time grid axis, which bounds live ranges / vreg pressure.
    for i in range(CT):
        x_i = x_ref[:, i * D:(i + 1) * D]                          # (BB, D) bf16
        u = jnp.dot(x_i, wih, preferred_element_type=jnp.float32) + bias
        h = jnp.tanh(u + jnp.dot(h, whh, preferred_element_type=jnp.float32))
    h_ref[...] = h

    @pl.when(t == pl.num_programs(1) - 1)
    def _finalize():
        # Padded logit lanes carry a -1e30 bias: exp underflows to exactly 0,
        # the normalizer is untouched, and the (BB, Op) store is lane-dense.
        logits = jnp.dot(h, wfc_ref[...],
                         preferred_element_type=jnp.float32) + bfc_ref[...]
        m = jnp.max(logits, axis=-1, keepdims=True)
        z = logits - m
        lse = jnp.log(jnp.sum(jnp.exp(z), axis=-1, keepdims=True))
        out_ref[...] = (z - lse).astype(out_ref.dtype)


@jax.jit
def rnn_classifier_forward(x, w_ih, w_hh, b_ih, b_hh, w_fc, b_fc):
    """x: (B, T, D) float32.  Weights use PyTorch conventions:
       w_ih: (H, D), w_hh: (H, H), b_ih/b_hh: (H,), w_fc: (O, H), b_fc: (O,).
       Returns (B, O) log-probabilities."""
    B, T, D = x.shape
    H = w_hh.shape[0]
    O = w_fc.shape[0]
    Hp = _round_up(H, 128)     # lane/MXU-dense hidden dim (real model H=512 already ok)
    Op = _round_up(O, 128)     # lane-dense class dim
    Bp = _round_up(B, 8)       # sublane-aligned batch
    BB = _pick_batch_block(Bp)
    CT = _pick_time_chunk(T)

    # Free reshape (no transpose / time-major repack); cast the streamed operand
    # to bf16 to halve HBM traffic for the dominant input stream.
    x2 = x.reshape(B, T * D).astype(jnp.bfloat16)
    if Bp != B:
        x2 = jnp.pad(x2, ((0, Bp - B), (0, 0)))

    wih_t = jnp.pad(w_ih.T.astype(jnp.bfloat16), ((0, 0), (0, Hp - H)))     # (D, Hp)
    whh_t = jnp.pad(w_hh.T.astype(jnp.float32), ((0, Hp - H), (0, Hp - H))) # (Hp, Hp)
    b = jnp.pad((b_ih + b_hh).astype(jnp.float32), (0, Hp - H)).reshape(1, Hp)
    wfc_t = jnp.pad(w_fc.T.astype(jnp.float32), ((0, Hp - H), (0, Op - O))) # (Hp, Op)
    bfc = jnp.pad(b_fc.astype(jnp.float32), (0, Op - O),
                  constant_values=-1e30).reshape(1, Op)                     # (1, Op)

    grid = (Bp // BB, T // CT)
    out_p = pl.pallas_call(
        functools.partial(_rnn_classifier_kernel, CT=CT, D=D),
        out_shape=jax.ShapeDtypeStruct((Bp, Op), jnp.float32),
        grid_spec=pltpu.PrefetchScalarGridSpec(
            num_scalar_prefetch=0,
            grid=grid,
            in_specs=[
                pl.BlockSpec((BB, CT * D), lambda b_, t_: (b_, t_)),  # streamed x
                pl.BlockSpec((D, Hp), lambda b_, t_: (0, 0)),         # resident weights
                pl.BlockSpec((Hp, Hp), lambda b_, t_: (0, 0)),
                pl.BlockSpec((1, Hp), lambda b_, t_: (0, 0)),
                pl.BlockSpec((Hp, Op), lambda b_, t_: (0, 0)),
                pl.BlockSpec((1, Op), lambda b_, t_: (0, 0)),
            ],
            out_specs=pl.BlockSpec((BB, Op), lambda b_, t_: (b_, 0)),
            scratch_shapes=[pltpu.VMEM((BB, Hp), jnp.float32)],
        ),
        compiler_params=pltpu.CompilerParams(
            dimension_semantics=("parallel", "arbitrary"),
            vmem_limit_bytes=48 * 1024 * 1024,   # headroom vs v7x 64 MiB physical
        ),
    )(x2, wih_t, whh_t, b, wfc_t, bfc)
    return out_p[:B, :O]


def _reference_forward(x, w_ih, w_hh, b_ih, b_hh, w_fc, b_fc):
    """Pure-JAX reference matching PyTorch semantics (f32 recurrence)."""
    B = x.shape[0]
    H = w_hh.shape[0]

    def step(h, x_t):
        h_new = jnp.tanh(x_t @ w_ih.T + b_ih + h @ w_hh.T + b_hh)
        return h_new, h_new

    h0 = jnp.zeros((B, H), jnp.float32)
    h_last, _ = lax.scan(step, h0, jnp.transpose(x, (1, 0, 2)))
    logits = h_last @ w_fc.T + b_fc
    return jax.nn.log_softmax(logits, axis=1)


if __name__ == "__main__":
    def run_case(key, B, T, D, H, O, tag):
        ks = jax.random.split(key, 7)
        bound = 1.0 / (H ** 0.5)   # mimic PyTorch's U(-1/sqrt(H), 1/sqrt(H))
        w_ih = jax.random.uniform(ks[0], (H, D), jnp.float32, -bound, bound)
        w_hh = jax.random.uniform(ks[1], (H, H), jnp.float32, -bound, bound)
        b_ih = jax.random.uniform(ks[2], (H,), jnp.float32, -bound, bound)
        b_hh = jax.random.uniform(ks[3], (H,), jnp.float32, -bound, bound)
        w_fc = jax.random.uniform(ks[4], (O, H), jnp.float32, -bound, bound)
        b_fc = jax.random.uniform(ks[5], (O,), jnp.float32, -bound, bound)
        x = jax.random.normal(ks[6], (B, T, D), jnp.float32)

        out = jax.block_until_ready(
            rnn_classifier_forward(x, w_ih, w_hh, b_ih, b_hh, w_fc, b_fc))
        assert out.shape == (B, O)

        # Reference with the same bf16 quantization of the streamed operands
        # (x, W_ih) the kernel applies; recurrence + head stay f32.
        x_q = x.astype(jnp.bfloat16).astype(jnp.float32)
        wih_q = w_ih.astype(jnp.bfloat16).astype(jnp.float32)
        ref = _reference_forward(x_q, wih_q, w_hh, b_ih, b_hh, w_fc, b_fc)
        err = float(jnp.max(jnp.abs(out - ref)))
        assert jnp.allclose(out, ref, atol=2e-3, rtol=2e-3), (tag, err)

    key = jax.random.PRNGKey(0)
    k1, k2, k3 = jax.random.split(key, 3)
    # multi-step sequence exercising the recurrence + time grid axis
    run_case(k1, B=2, T=8, D=16, H=32, O=4, tag="seq")
    # shape pattern of MobileNetRNN's head at small dims (T=1, num_classes=40)
    run_case(k2, B=3, T=1, D=64, H=32, O=40, tag="head-small")
    # MobileNetRNN's actual head dims (feature_dim=1280, hidden=512, classes=40)
    run_case(k3, B=16, T=1, D=1280, H=512, O=40, tag="head-real")

    print("KERNEL_OK")
</pallas_src>

<mosaic_0001>
module attributes {stable_mosaic.version = 11 : i64} {
  func.func @_rnn_classifier_kernel(%arg0: i32, %arg1: i32, %arg2: memref<8x128xbf16, #tpu.memory_space<vmem>>, %arg3: memref<16x128xbf16, #tpu.memory_space<vmem>>, %arg4: memref<128x128xf32, #tpu.memory_space<vmem>>, %arg5: memref<1x128xf32, #tpu.memory_space<vmem>>, %arg6: memref<128x128xf32, #tpu.memory_space<vmem>>, %arg7: memref<1x128xf32, #tpu.memory_space<vmem>>, %arg8: memref<8x128xf32, #tpu.memory_space<vmem>>, %arg9: memref<8x128xf32, #tpu.memory_space<vmem>>) attributes {dimension_semantics = [#tpu.dimension_semantics<parallel>, #tpu.dimension_semantics<arbitrary>], iteration_bounds = array<i64: 1, 1>, scalar_prefetch = 0 : i64, scratch_operands = 1 : i64, tpu.core_type = #tpu.core_type<tc>, window_params = [{transform_indices = @transform_0, window_bounds = array<i64: 8, 128>}, {pipeline_mode = #tpu.pipeline_mode<synchronous>, transform_indices = @transform_1, window_bounds = array<i64: 16, 128>}, {pipeline_mode = #tpu.pipeline_mode<synchronous>, transform_indices = @transform_2, window_bounds = array<i64: 128, 128>}, {pipeline_mode = #tpu.pipeline_mode<synchronous>, transform_indices = @transform_3, window_bounds = array<i64: 1, 128>}, {pipeline_mode = #tpu.pipeline_mode<synchronous>, transform_indices = @transform_4, window_bounds = array<i64: 128, 128>}, {pipeline_mode = #tpu.pipeline_mode<synchronous>, transform_indices = @transform_5, window_bounds = array<i64: 1, 128>}, {transform_indices = @transform_6, window_bounds = array<i64: 8, 128>}]} {
    %c0_i32 = arith.constant 0 : i32
    %0 = arith.cmpi eq, %arg1, %c0_i32 : i32
    %1 = arith.extui %0 : i1 to i32
    %c0_i32_0 = arith.constant 0 : i32
    %2 = arith.cmpi ne, %1, %c0_i32_0 : i32
    scf.if %2 {
      %cst_36 = arith.constant 0.000000e+00 : f32
      %61 = vector.broadcast %cst_36 : f32 to vector<8x128xf32>
      %c0_37 = arith.constant 0 : index
      %c0_38 = arith.constant 0 : index
      %62 = vector.load %arg9[%c0_37, %c0_38] : memref<8x128xf32, #tpu.memory_space<vmem>>, vector<8x128xf32>
      tpu.vector_store %arg9[%c0_37, %c0_38], %61 {strides = array<i32>} : memref<8x128xf32, #tpu.memory_space<vmem>>, vector<8x128xf32>,
    } else {
    }
    %c0 = arith.constant 0 : index
    %c0_1 = arith.constant 0 : index
    %3 = vector.load %arg3[%c0, %c0_1] : memref<16x128xbf16, #tpu.memory_space<vmem>>, vector<16x128xbf16>
    %c0_2 = arith.constant 0 : index
    %c0_3 = arith.constant 0 : index
    %4 = vector.load %arg4[%c0_2, %c0_3] : memref<128x128xf32, #tpu.memory_space<vmem>>, vector<128x128xf32>
    %c0_4 = arith.constant 0 : index
    %c0_5 = arith.constant 0 : index
    %5 = vector.load %arg9[%c0_4, %c0_5] : memref<8x128xf32, #tpu.memory_space<vmem>>, vector<8x128xf32>
    %c0_6 = arith.constant 0 : index
    %c0_7 = arith.constant 0 : index
    %6 = vector.load %arg5[%c0_6, %c0_7] : memref<1x128xf32, #tpu.memory_space<vmem>>, vector<1x128xf32>
    %7 = vector.shape_cast %6 : vector<1x128xf32> to vector<1x128xf32>
    %8 = vector.broadcast %7 : vector<1x128xf32> to vector<8x128xf32>
    %c0_8 = arith.constant 0 : index
    %c0_9 = arith.constant 0 : index
    %9 = vector.load %arg2[%c0_8, %c0_9] : memref<8x128xbf16, #tpu.memory_space<vmem>>, vector<8x16xbf16>
    %cst = arith.constant dense<0.000000e+00> : vector<8x128xf32>
    %10 = tpu.matmul %9, %3, %cst {dimension_numbers = #tpu.dot_dimension_numbers<[1], [0], [0], [1], [0, 0, 1, 1], [], []>} : vector<8x16xbf16>, vector<16x128xbf16>, vector<8x128xf32> -> vector<8x128xf32>
    %11 = arith.addf %10, %8 : vector<8x128xf32>
    %cst_10 = arith.constant dense<0.000000e+00> : vector<8x128xf32>
    %12 = tpu.matmul %5, %4, %cst_10 {dimension_numbers = #tpu.dot_dimension_numbers<[1], [0], [0], [1], [0, 0, 1, 1], [], []>} : vector<8x128xf32>, vector<128x128xf32>, vector<8x128xf32> -> vector<8x128xf32>
    %13 = arith.addf %11, %12 : vector<8x128xf32>
    %14 = math.tanh %13 : vector<8x128xf32>
    %c0_11 = arith.constant 0 : index
    %c16 = arith.constant 16 : index
    %15 = vector.load %arg2[%c0_11, %c16] : memref<8x128xbf16, #tpu.memory_space<vmem>>, vector<8x16xbf16>
    %cst_12 = arith.constant dense<0.000000e+00> : vector<8x128xf32>
    %16 = tpu.matmul %15, %3, %cst_12 {dimension_numbers = #tpu.dot_dimension_numbers<[1], [0], [0], [1], [0, 0, 1, 1], [], []>} : vector<8x16xbf16>, vector<16x128xbf16>, vector<8x128xf32> -> vector<8x128xf32>
    %17 = arith.addf %16, %8 : vector<8x128xf32>
    %cst_13 = arith.constant dense<0.000000e+00> : vector<8x128xf32>
    %18 = tpu.matmul %14, %4, %cst_13 {dimension_numbers = #tpu.dot_dimension_numbers<[1], [0], [0], [1], [0, 0, 1, 1], [], []>} : vector<8x128xf32>, vector<128x128xf32>, vector<8x128xf32> -> vector<8x128xf32>
    %19 = arith.addf %17, %18 : vector<8x128xf32>
    %20 = math.tanh %19 : vector<8x128xf32>
    %c0_14 = arith.constant 0 : index
    %c32 = arith.constant 32 : index
    %21 = vector.load %arg2[%c0_14, %c32] : memref<8x128xbf16, #tpu.memory_space<vmem>>, vector<8x16xbf16>
    %cst_15 = arith.constant dense<0.000000e+00> : vector<8x128xf32>
    %22 = tpu.matmul %21, %3, %cst_15 {dimension_numbers = #tpu.dot_dimension_numbers<[1], [0], [0], [1], [0, 0, 1, 1], [], []>} : vector<8x16xbf16>, vector<16x128xbf16>, vector<8x128xf32> -> vector<8x128xf32>
    %23 = arith.addf %22, %8 : vector<8x128xf32>
    %cst_16 = arith.constant dense<0.000000e+00> : vector<8x128xf32>
    %24 = tpu.matmul %20, %4, %cst_16 {dimension_numbers = #tpu.dot_dimension_numbers<[1], [0], [0], [1], [0, 0, 1, 1], [], []>} : vector<8x128xf32>, vector<128x128xf32>, vector<8x128xf32> -> vector<8x128xf32>
    %25 = arith.addf %23, %24 : vector<8x128xf32>
    %26 = math.tanh %25 : vector<8x128xf32>
    %c0_17 = arith.constant 0 : index
    %c48 = arith.constant 48 : index
    %27 = vector.load %arg2[%c0_17, %c48] : memref<8x128xbf16, #tpu.memory_space<vmem>>, vector<8x16xbf16>
    %cst_18 = arith.constant dense<0.000000e+00> : vector<8x128xf32>
    %28 = tpu.matmul %27, %3, %cst_18 {dimension_numbers = #tpu.dot_dimension_numbers<[1], [0], [0], [1], [0, 0, 1, 1], [], []>} : vector<8x16xbf16>, vector<16x128xbf16>, vector<8x128xf32> -> vector<8x128xf32>
    %29 = arith.addf %28, %8 : vector<8x128xf32>
    %cst_19 = arith.constant dense<0.000000e+00> : vector<8x128xf32>
    %30 = tpu.matmul %26, %4, %cst_19 {dimension_numbers = #tpu.dot_dimension_numbers<[1], [0], [0], [1], [0, 0, 1, 1], [], []>} : vector<8x128xf32>, vector<128x128xf32>, vector<8x128xf32> -> vector<8x128xf32>
    %31 = arith.addf %29, %30 : vector<8x128xf32>
    %32 = math.tanh %31 : vector<8x128xf32>
    %c0_20 = arith.constant 0 : index
    %c64 = arith.constant 64 : index
    %33 = vector.load %arg2[%c0_20, %c64] : memref<8x128xbf16, #tpu.memory_space<vmem>>, vector<8x16xbf16>
    %cst_21 = arith.constant dense<0.000000e+00> : vector<8x128xf32>
    %34 = tpu.matmul %33, %3, %cst_21 {dimension_numbers = #tpu.dot_dimension_numbers<[1], [0], [0], [1], [0, 0, 1, 1], [], []>} : vector<8x16xbf16>, vector<16x128xbf16>, vector<8x128xf32> -> vector<8x128xf32>
    %35 = arith.addf %34, %8 : vector<8x128xf32>
    %cst_22 = arith.constant dense<0.000000e+00> : vector<8x128xf32>
    %36 = tpu.matmul %32, %4, %cst_22 {dimension_numbers = #tpu.dot_dimension_numbers<[1], [0], [0], [1], [0, 0, 1, 1], [], []>} : vector<8x128xf32>, vector<128x128xf32>, vector<8x128xf32> -> vector<8x128xf32>
    %37 = arith.addf %35, %36 : vector<8x128xf32>
    %38 = math.tanh %37 : vector<8x128xf32>
    %c0_23 = arith.constant 0 : index
    %c80 = arith.constant 80 : index
    %39 = vector.load %arg2[%c0_23, %c80] : memref<8x128xbf16, #tpu.memory_space<vmem>>, vector<8x16xbf16>
    %cst_24 = arith.constant dense<0.000000e+00> : vector<8x128xf32>
    %40 = tpu.matmul %39, %3, %cst_24 {dimension_numbers = #tpu.dot_dimension_numbers<[1], [0], [0], [1], [0, 0, 1, 1], [], []>} : vector<8x16xbf16>, vector<16x128xbf16>, vector<8x128xf32> -> vector<8x128xf32>
    %41 = arith.addf %40, %8 : vector<8x128xf32>
    %cst_25 = arith.constant dense<0.000000e+00> : vector<8x128xf32>
    %42 = tpu.matmul %38, %4, %cst_25 {dimension_numbers = #tpu.dot_dimension_numbers<[1], [0], [0], [1], [0, 0, 1, 1], [], []>} : vector<8x128xf32>, vector<128x128xf32>, vector<8x128xf32> -> vector<8x128xf32>
    %43 = arith.addf %41, %42 : vector<8x128xf32>
    %44 = math.tanh %43 : vector<8x128xf32>
    %c0_26 = arith.constant 0 : index
    %c96 = arith.constant 96 : index
    %45 = vector.load %arg2[%c0_26, %c96] : memref<8x128xbf16, #tpu.memory_space<vmem>>, vector<8x16xbf16>
    %cst_27 = arith.constant dense<0.000000e+00> : vector<8x128xf32>
    %46 = tpu.matmul %45, %3, %cst_27 {dimension_numbers = #tpu.dot_dimension_numbers<[1], [0], [0], [1], [0, 0, 1, 1], [], []>} : vector<8x16xbf16>, vector<16x128xbf16>, vector<8x128xf32> -> vector<8x128xf32>
    %47 = arith.addf %46, %8 : vector<8x128xf32>
    %cst_28 = arith.constant dense<0.000000e+00> : vector<8x128xf32>
    %48 = tpu.matmul %44, %4, %cst_28 {dimension_numbers = #tpu.dot_dimension_numbers<[1], [0], [0], [1], [0, 0, 1, 1], [], []>} : vector<8x128xf32>, vector<128x128xf32>, vector<8x128xf32> -> vector<8x128xf32>
    %49 = arith.addf %47, %48 : vector<8x128xf32>
    %50 = math.tanh %49 : vector<8x128xf32>
    %c0_29 = arith.constant 0 : index
    %c112 = arith.constant 112 : index
    %51 = vector.load %arg2[%c0_29, %c112] : memref<8x128xbf16, #tpu.memory_space<vmem>>, vector<8x16xbf16>
    %cst_30 = arith.constant dense<0.000000e+00> : vector<8x128xf32>
    %52 = tpu.matmul %51, %3, %cst_30 {dimension_numbers = #tpu.dot_dimension_numbers<[1], [0], [0], [1], [0, 0, 1, 1], [], []>} : vector<8x16xbf16>, vector<16x128xbf16>, vector<8x128xf32> -> vector<8x128xf32>
    %53 = arith.addf %52, %8 : vector<8x128xf32>
    %cst_31 = arith.constant dense<0.000000e+00> : vector<8x128xf32>
    %54 = tpu.matmul %50, %4, %cst_31 {dimension_numbers = #tpu.dot_dimension_numbers<[1], [0], [0], [1], [0, 0, 1, 1], [], []>} : vector<8x128xf32>, vector<128x128xf32>, vector<8x128xf32> -> vector<8x128xf32>
    %55 = arith.addf %53, %54 : vector<8x128xf32>
    %56 = math.tanh %55 : vector<8x128xf32>
    %c0_32 = arith.constant 0 : index
    %c0_33 = arith.constant 0 : index
    %57 = vector.load %arg9[%c0_32, %c0_33] : memref<8x128xf32, #tpu.memory_space<vmem>>, vector<8x128xf32>
    tpu.vector_store %arg9[%c0_32, %c0_33], %56 {strides = array<i32>} : memref<8x128xf32, #tpu.memory_space<vmem>>, vector<8x128xf32>,
    %c0_i32_34 = arith.constant 0 : i32
    %58 = arith.cmpi eq, %arg1, %c0_i32_34 : i32
    %59 = arith.extui %58 : i1 to i32
    %c0_i32_35 = arith.constant 0 : i32
    %60 = arith.cmpi ne, %59, %c0_i32_35 : i32
    scf.if %60 {
      %c0_36 = arith.constant 0 : index
      %c0_37 = arith.constant 0 : index
      %61 = vector.load %arg6[%c0_36, %c0_37] : memref<128x128xf32, #tpu.memory_space<vmem>>, vector<128x128xf32>
      %cst_38 = arith.constant dense<0.000000e+00> : vector<8x128xf32>
      %62 = tpu.matmul %56, %61, %cst_38 {dimension_numbers = #tpu.dot_dimension_numbers<[1], [0], [0], [1], [0, 0, 1, 1], [], []>} : vector<8x128xf32>, vector<128x128xf32>, vector<8x128xf32> -> vector<8x128xf32>
      %c0_39 = arith.constant 0 : index
      %c0_40 = arith.constant 0 : index
      %63 = vector.load %arg7[%c0_39, %c0_40] : memref<1x128xf32, #tpu.memory_space<vmem>>, vector<1x128xf32>
      %64 = vector.broadcast %63 : vector<1x128xf32> to vector<8x128xf32>
      %65 = arith.addf %62, %64 : vector<8x128xf32>
      %cst_41 = arith.constant dense<0xFF800000> : vector<8xf32>
      %66 = vector.multi_reduction <maximumf>, %65, %cst_41 [1] : vector<8x128xf32> to vector<8xf32>
      %67 = vector.shape_cast %66 : vector<8xf32> to vector<8x1xf32>
      %68 = vector.broadcast %67 : vector<8x1xf32> to vector<8x128xf32>
      %69 = arith.subf %65, %68 : vector<8x128xf32>
      %70 = math.exp %69 : vector<8x128xf32>
      %cst_42 = arith.constant dense<0.000000e+00> : vector<8xf32>
      %71 = vector.multi_reduction <add>, %70, %cst_42 [1] : vector<8x128xf32> to vector<8xf32>
      %72 = vector.shape_cast %71 : vector<8xf32> to vector<8x1xf32>
      %73 = math.log %72 : vector<8x1xf32>
      %74 = vector.broadcast %73 : vector<8x1xf32> to vector<8x128xf32>
      %75 = arith.subf %69, %74 : vector<8x128xf32>
      %c0_43 = arith.constant 0 : index
      %c0_44 = arith.constant 0 : index
      %76 = vector.load %arg8[%c0_43, %c0_44] : memref<8x128xf32, #tpu.memory_space<vmem>>, vector<8x128xf32>
      tpu.vector_store %arg8[%c0_43, %c0_44], %75 {strides = array<i32>} : memref<8x128xf32, #tpu.memory_space<vmem>>, vector<8x128xf32>,
    } else {
    }
    return
  }
  func.func @transform_0(%arg0: i32, %arg1: i32) -> (i32, i32) {
    %c0_i32 = arith.constant 0 : i32
    return %arg0, %arg1 : i32, i32
  }
  func.func @transform_1(%arg0: i32, %arg1: i32) -> (i32, i32) {
    %c0_i32 = arith.constant 0 : i32
    %c0_i32_0 = arith.constant 0 : i32
    %c0_i32_1 = arith.constant 0 : i32
    return %c0_i32, %c0_i32_0 : i32, i32
  }
  func.func @transform_2(%arg0: i32, %arg1: i32) -> (i32, i32) {
    %c0_i32 = arith.constant 0 : i32
    %c0_i32_0 = arith.constant 0 : i32
    %c0_i32_1 = arith.constant 0 : i32
    return %c0_i32, %c0_i32_0 : i32, i32
  }
  func.func @transform_3(%arg0: i32, %arg1: i32) -> (i32, i32) {
    %c0_i32 = arith.constant 0 : i32
    %c0_i32_0 = arith.constant 0 : i32
    %c0_i32_1 = arith.constant 0 : i32
    return %c0_i32, %c0_i32_0 : i32, i32
  }
  func.func @transform_4(%arg0: i32, %arg1: i32) -> (i32, i32) {
    %c0_i32 = arith.constant 0 : i32
    %c0_i32_0 = arith.constant 0 : i32
    %c0_i32_1 = arith.constant 0 : i32
    return %c0_i32, %c0_i32_0 : i32, i32
  }
  func.func @transform_5(%arg0: i32, %arg1: i32) -> (i32, i32) {
    %c0_i32 = arith.constant 0 : i32
    %c0_i32_0 = arith.constant 0 : i32
    %c0_i32_1 = arith.constant 0 : i32
    return %c0_i32, %c0_i32_0 : i32, i32
  }
  func.func @transform_6(%arg0: i32, %arg1: i32) -> (i32, i32) {
    %c0_i32 = arith.constant 0 : i32
    %c0_i32_0 = arith.constant 0 : i32
    return %arg0, %c0_i32 : i32, i32
  }
}

</mosaic_0001>

<bundles_post_ra>
// kernel: rnn_classifier_forward.1
= control target key start
LH: loop header
LB: loop body
LE: loop exit
PB: predicated region body
PF: predicated region fallthrough
CT: control target
= control target key end

     0   :  { %vm59_vm0 = vcmask 130048   ;;  %s483_s11 = smov 112   ;;  %v484_v20 = vmov 0.0   ;;  %s487_s9 = smov 64   ;;  %s834_s2 = inlined_call_operand.vmem [shape: f32[128,128], index: 2, kind: input, shape index: {}]   ;;  %s835_s1 = inlined_call_operand.vmem [shape: bf16[16,128], index: 1, kind: input, shape index: {}]   ;;  %s836_s0 = inlined_call_operand.vmem [shape: bf16[8,128], index: 0, kind: input, shape index: {}]   ;;  %s837_s3 = inlined_call_operand.vmem [shape: f32[1,128], index: 3, kind: input, shape index: {}]   ;;  %s838_s4 = inlined_call_operand.vmem [shape: f32[128,128], index: 4, kind: input, shape index: {}]   ;;  %s839_s5 = inlined_call_operand.vmem [shape: f32[1,128], index: 5, kind: input, shape index: {}]   ;;  %s840_s6 = inlined_call_operand.vmem [shape: f32[8,128], index: 6, kind: output, shape index: {}]  }
   0x1   :  { %v529_v0 = vld [vmem:[%s834_s2 + $0x78] sm:$0xff]  ;;  %v534_v1 = vld [vmem:[%s834_s2 + $0x70] sm:$0xff]  ;;  %v540_v2 = vld [vmem:[%s834_s2 + $0x68] sm:$0xff]  ;;  %s489_s10 = smov 32  }
   0x2   :  { %76 = vmatpush.msra.mxu1 %v529_v0  ;;  %v545_v3 = vld [vmem:[%s835_s1] sm:$0xff]  ;;  %v563_v7 = vld [vmem:[%s834_s2 + $0x58] sm:$0xff]  ;;  %v574_v9 = vld [vmem:[%s834_s2 + $0x50] sm:$0xff] }
   0x3   :  { %v52_v4 = vld [vmem:[%s836_s0] sm:$0xf]  ;;  %70 = vmatpush.bf16.msra.mxu3 %v545_v3  ;;  %113 = vmatpush.bf16.msra.mxu2 %v545_v3  ;;  %v583_v10 = vld [vmem:[%s834_s2 + $0x48] sm:$0xff]  ;;  %v600_v12 = vld [vmem:[%s834_s2 + $0x38] sm:$0xff]  ;;  %s488_s0 = smov 48  }
   0x4   :  { %77 = vmatpush.msra.mxu1 %v534_v1  ;;  %v554_v5 = vld [vmem:[%s834_s2 + $0x60] sm:$0xff]  ;;  %v99_v6 = vunpack.c.l.b16 %v52_v4  ;;  %153 = vmatpush.bf16.msra.mxu0 %v545_v3  ;;  %v608_v13 = vld [vmem:[%s834_s2 + $0x30] sm:$0xff]  ;;  %v616_v14 = vld [vmem:[%s834_s2 + $0x28] sm:$0xff] }
   0x5   :  { %v592_v11 = vld [vmem:[%s834_s2 + $0x40] sm:$0xff]  ;;  %v632_v16 = vld [vmem:[%s834_s2 + $0x18] sm:$0xff]  ;;  %v640_v17 = vld [vmem:[%s834_s2 + $0x10] sm:$0xff] }
   0x6   :  { %78 = vmatpush.msra.mxu1 %v540_v2  ;;  %v565_v8 = vpack.c.b16 %v99_v6, %v99_v6  ;;  %444 = vmatmul.msk.bf16.vlgmr.msra.gmra.mxu3 %vm59_vm0, %v52_v4  ;;  %v624_v15 = vld [vmem:[%s834_s2 + $0x20] sm:$0xff]  ;;  %v648_v18 = vld [vmem:[%s834_s2 + $0x8] sm:$0xff]  ;;  %v399_v4 = vld [vmem:[%s838_s4 + $0x70] sm:$0xff] }
   0x7   :  { %119 = vmatpush.msrb.mxu3 %v529_v0  ;;  %159 = vmatpush.msrb.mxu2 %v529_v0  ;;  %v656_v19 = vld [vmem:[%s834_s2] sm:$0xff]  ;;  %s485_s2 = smov 96  }
   0x8   :  { %79 = vmatpush.msra.mxu1 %v554_v5  ;;  %101 = vrot.lane.b32.xlu0 %v565_v8, %s483_s11  ;;  %v693_v24 = vld [vmem:[%s837_s3] ss:$0 sm:$0xff]  ;;  %s486_s3 = smov 80   ;;  %s490_s11 = smov 16  }
   0x9   :  { %120 = vmatpush.msrb.mxu3 %v534_v1  ;;  %160 = vmatpush.msrb.mxu2 %v534_v1  ;;  %v397_v6 = vld [vmem:[%s838_s4 + $0x60] sm:$0xff] }
   0xa   :  { %80 = vmatpush.msra.mxu1 %v563_v7  ;;  %193 = vmatpush.bf16.msrb.mxu0 %v545_v3 }
   0xb   :  { %121 = vmatpush.msrb.mxu3 %v540_v2  ;;  %161 = vmatpush.msrb.mxu2 %v540_v2 }
   0xc   :  { %81 = vmatpush.msra.mxu1 %v574_v9  ;;  %181 = vrot.lane.b32.xlu1 %v565_v8, %s486_s3 }
   0xd   :  { %122 = vmatpush.msrb.mxu3 %v554_v5  ;;  %162 = vmatpush.msrb.mxu2 %v554_v5 }
   0xe   :  { %82 = vmatpush.msra.mxu1 %v583_v10  ;;  %261 = vrot.lane.b32.xlu2 %v565_v8, %s488_s0 }
   0xf   :  { %123 = vmatpush.msrb.mxu3 %v563_v7  ;;  %163 = vmatpush.msrb.mxu2 %v563_v7 }
  0x10   :  { %83 = vmatpush.msra.mxu1 %v592_v11  ;;  %141 = vrot.lane.b32.xlu0 %v565_v8, %s485_s2 }
  0x11   :  { %124 = vmatpush.msrb.mxu3 %v574_v9  ;;  %164 = vmatpush.msrb.mxu2 %v574_v9 }
  0x12   :  { %84 = vmatpush.msra.mxu1 %v600_v12 }
  0x13   :  { %125 = vmatpush.msrb.mxu3 %v583_v10  ;;  %165 = vmatpush.msrb.mxu2 %v583_v10 }
  0x14   :  { %85 = vmatpush.msra.mxu1 %v608_v13  ;;  %221 = vrot.lane.b32.xlu1 %v565_v8, %s487_s9 }
  0x15   :  { %126 = vmatpush.msrb.mxu3 %v592_v11  ;;  %166 = vmatpush.msrb.mxu2 %v592_v11 }
  0x16   :  { %86 = vmatpush.msra.mxu1 %v616_v14  ;;  %301 = vrot.lane.b32.xlu2 %v565_v8, %s489_s10 }
  0x17   :  { %127 = vmatpush.msrb.mxu3 %v600_v12  ;;  %167 = vmatpush.msrb.mxu2 %v600_v12 }
  0x18   :  { %87 = vmatpush.msra.mxu1 %v624_v15  ;;  %341 = vrot.lane.b32.xlu0 %v565_v8, %s490_s11  ;;  %v395_v8 = vld [vmem:[%s838_s4 + $0x50] sm:$0xff] }
  0x19   :  { %128 = vmatpush.msrb.mxu3 %v608_v13  ;;  %168 = vmatpush.msrb.mxu2 %v608_v13 }
  0x1a   :  { %88 = vmatpush.msra.mxu1 %v632_v16 }
  0x1b   :  { %129 = vmatpush.msrb.mxu3 %v616_v14  ;;  %169 = vmatpush.msrb.mxu2 %v616_v14 }
  0x1c   :  { %89 = vmatpush.msra.mxu1 %v640_v17 }
  0x1d   :  { %130 = vmatpush.msrb.mxu3 %v624_v15  ;;  %170 = vmatpush.msrb.mxu2 %v624_v15 }
  0x1e   :  { %90 = vmatpush.msra.mxu1 %v648_v18 }
  0x1f   :  { %131 = vmatpush.msrb.mxu3 %v632_v16  ;;  %171 = vmatpush.msrb.mxu2 %v632_v16 }
  0x20   :  { %91 = vmatpush.msra.mxu1 %v656_v19 }
  0x21   :  { %92 = vmatmul.f32.vlgmr.msra.gmra.mxu1 %v484_v20  ;;  %132 = vmatpush.msrb.mxu3 %v640_v17  ;;  %v389_v20 = vld [vmem:[%s838_s4 + $0x20] sm:$0xff] }
  0x22   :  { %172 = vmatpush.msrb.mxu2 %v640_v17  ;;  %199 = vmatpush.msrb.mxu1 %v529_v0 }
  0x23   :  { %133 = vmatpush.msrb.mxu3 %v648_v18 }
  0x24   :  { %173 = vmatpush.msrb.mxu2 %v648_v18  ;;  %200 = vmatpush.msrb.mxu1 %v534_v1 }
  0x25   :  { %134 = vmatpush.msrb.mxu3 %v656_v19 }
  0x26   :  { %174 = vmatpush.msrb.mxu2 %v656_v19  ;;  %201 = vmatpush.msrb.mxu1 %v540_v2 }
  0x27   :  { %233 = vmatpush.bf16.msra.mxu3 %v545_v3 }
  0x28   :  { %202 = vmatpush.msrb.mxu1 %v554_v5 }
  0x2a   :  { %203 = vmatpush.msrb.mxu1 %v563_v7 }
  0x2c   :  { %204 = vmatpush.msrb.mxu1 %v574_v9 }
  0x2e   :  { %205 = vmatpush.msrb.mxu1 %v583_v10 }
  0x30   :  { %206 = vmatpush.msrb.mxu1 %v592_v11 }
  0x32   :  { %207 = vmatpush.msrb.mxu1 %v600_v12 }
  0x34   :  { %208 = vmatpush.msrb.mxu1 %v608_v13 }
  0x36   :  { %209 = vmatpush.msrb.mxu1 %v616_v14 }
  0x38   :  { %210 = vmatpush.msrb.mxu1 %v624_v15 }
  0x3a   :  { %211 = vmatpush.msrb.mxu1 %v632_v16 }
  0x3c   :  { %212 = vmatpush.msrb.mxu1 %v640_v17 }
  0x3e   :  { %213 = vmatpush.msrb.mxu1 %v648_v18 }
  0x40   :  { %214 = vmatpush.msrb.mxu1 %v656_v19 }
  0x68   :  { %v262_v48 = vpop.permute.xlu2 %261 }
  0x70   :  { %v302_v53 = vpop.permute.xlu2 %301 }
  0x7a   :  { %v102_v21 = vpop.permute.xlu0 %101 }
  0x7b   :  { %445 = vmatmul.msk.bf16.vlgmr.msra.gmra.mxu2 %vm59_vm0, %v102_v21  ;;  %v388_v21 = vld [vmem:[%s838_s4 + $0x18] sm:$0xff] }
  0x7c   :  { %273 = vmatpush.bf16.msra.mxu2 %v545_v3 }
  0x7e   :  { %v182_v36 = vpop.permute.xlu1 %181 }
  0x82   :  { %v142_v31 = vpop.permute.xlu0 %141 }
  0x83   :  { %446 = vmatmul.msk.bf16.vlgmr.msra.gmra.mxu0 %vm59_vm0, %v142_v31 }
  0x84   :  { %239 = vmatpush.msra.mxu0 %v529_v0 }
  0x86   :  { %240 = vmatpush.msra.mxu0 %v534_v1  ;;  %v222_v43 = vpop.permute.xlu1 %221 }
  0x88   :  { %241 = vmatpush.msra.mxu0 %v540_v2 }
  0x89   :  { %v72_v22 = vpop.f32.mrf.mxu3 }
  0x8a   :  { %v73_v25 = vadd.f32 %v693_v24, %v72_v22  ;;  %242 = vmatpush.msra.mxu0 %v554_v5  ;;  %v342_v63 = vpop.permute.xlu0 %341  ;;  %v387_v22 = vld [vmem:[%s838_s4 + $0x10] sm:$0xff] }
  0x8c   :  { %243 = vmatpush.msra.mxu0 %v563_v7 }
  0x8e   :  { %244 = vmatpush.msra.mxu0 %v574_v9 }
  0x90   :  { %245 = vmatpush.msra.mxu0 %v583_v10 }
  0x91   :  { %v74_v23 = vpop.f32.mrf.mxu3 }
  0x92   :  { %246 = vmatpush.msra.mxu0 %v592_v11  ;;  %v386_v23 = vld [vmem:[%s838_s4 + $0x8] sm:$0xff] }
  0x93   :  { %447 = vmatmul.msk.bf16.vlgmr.msrb.gmra.mxu0 %vm59_vm0, %v182_v36 }
  0x94   :  { %247 = vmatpush.msra.mxu0 %v600_v12 }
  0x96   :  { %248 = vmatpush.msra.mxu0 %v608_v13 }
  0x98   :  { %249 = vmatpush.msra.mxu0 %v616_v14 }
  0x9a   :  { %250 = vmatpush.msra.mxu0 %v624_v15 }
  0x9c   :  { %251 = vmatpush.msra.mxu0 %v632_v16 }
  0x9e   :  { %v93_v26 = vpop.f32.mrf.mxu1  ;;  %252 = vmatpush.msra.mxu0 %v640_v17 }
  0x9f   :  { %v96_v27 = vadd.f32 %v93_v26, %v73_v25  ;;  %v385_v25 = vld [vmem:[%s838_s4] sm:$0xff] }
  0xa0   :  { %253 = vmatpush.msra.mxu0 %v648_v18 }
  0xa1   :  { %463 = vtanh.f32 %v96_v27 }
  0xa2   :  { %254 = vmatpush.msra.mxu0 %v656_v19 }
  0xa4   :  { %359 = vmatpush.msrb.mxu0 %v529_v0 }
  0xa6   :  { %360 = vmatpush.msrb.mxu0 %v534_v1 }
  0xa7   :  { %v464_v28 = vpop.eup %463 }
  0xa8   :  { %135 = vmatmul.f32.vlgmr.msrb.gmra.mxu3 %v464_v28  ;;  %361 = vmatpush.msrb.mxu0 %v540_v2 }
  0xa9   :  { %279 = vmatpush.msrb.mxu3 %v529_v0 }
  0xaa   :  { %362 = vmatpush.msrb.mxu0 %v554_v5 }
  0xab   :  { %280 = vmatpush.msrb.mxu3 %v534_v1 }
  0xac   :  { %363 = vmatpush.msrb.mxu0 %v563_v7 }
  0xad   :  { %281 = vmatpush.msrb.mxu3 %v540_v2 }
  0xae   :  { %364 = vmatpush.msrb.mxu0 %v574_v9 }
  0xaf   :  { %282 = vmatpush.msrb.mxu3 %v554_v5 }
  0xb0   :  { %365 = vmatpush.msrb.mxu0 %v583_v10  ;;  %448 = vmatmul.msk.bf16.vlgmr.msra.gmra.mxu3 %vm59_vm0, %v222_v43 }
  0xb1   :  { %283 = vmatpush.msrb.mxu3 %v563_v7 }
  0xb2   :  { %366 = vmatpush.msrb.mxu0 %v592_v11 }
  0xb3   :  { %284 = vmatpush.msrb.mxu3 %v574_v9 }
  0xb4   :  { %367 = vmatpush.msrb.mxu0 %v600_v12 }
  0xb5   :  { %285 = vmatpush.msrb.mxu3 %v583_v10 }
  0xb6   :  { %368 = vmatpush.msrb.mxu0 %v608_v13 }
  0xb7   :  { %286 = vmatpush.msrb.mxu3 %v592_v11 }
  0xb8   :  { %369 = vmatpush.msrb.mxu0 %v616_v14 }
  0xb9   :  { %287 = vmatpush.msrb.mxu3 %v600_v12 }
  0xba   :  { %370 = vmatpush.msrb.mxu0 %v624_v15 }
  0xbb   :  { %288 = vmatpush.msrb.mxu3 %v608_v13 }
  0xbc   :  { %371 = vmatpush.msrb.mxu0 %v632_v16 }
  0xbd   :  { %289 = vmatpush.msrb.mxu3 %v616_v14 }
  0xbe   :  { %372 = vmatpush.msrb.mxu0 %v640_v17 }
  0xbf   :  { %290 = vmatpush.msrb.mxu3 %v624_v15 }
  0xc0   :  { %373 = vmatpush.msrb.mxu0 %v648_v18 }
  0xc1   :  { %291 = vmatpush.msrb.mxu3 %v632_v16 }
  0xc2   :  { %374 = vmatpush.msrb.mxu0 %v656_v19 }
  0xc3   :  { %292 = vmatpush.msrb.mxu3 %v640_v17 }
  0xc5   :  { %293 = vmatpush.msrb.mxu3 %v648_v18 }
  0xc7   :  { %294 = vmatpush.msrb.mxu3 %v656_v19 }
  0xc9   :  { %353 = vmatpush.bf16.msra.mxu3 %v545_v3 }
  0xfe   :  { %v115_v29 = vpop.f32.mrf.mxu2 }
  0xff   :  { %v116_v32 = vadd.f32 %v693_v24, %v115_v29 }
 0x100   :  { %v155_v37 = vpop.f32.mrf.mxu0 }
 0x101   :  { %v156_v39 = vadd.f32 %v693_v24, %v155_v37 }
 0x106   :  { %v117_v30 = vpop.f32.mrf.mxu2 }
 0x107   :  { %v462_v30 = vld [vmem:[%s839_s5] ss:$0 sm:$0xff] }
 0x108   :  { %v157_v38 = vpop.f32.mrf.mxu0 }
 0x110   :  { %v195_v44 = vpop.f32.mrf.mxu0 }
 0x111   :  { %v196_v46 = vadd.f32 %v693_v24, %v195_v44 }
 0x118   :  { %v197_v45 = vpop.f32.mrf.mxu0 }
 0x12b   :  { %v136_v33 = vpop.f32.mrf.mxu3 }
 0x12c   :  { %v139_v34 = vadd.f32 %v136_v33, %v116_v32 }
 0x12e   :  { %465 = vtanh.f32 %v139_v34 }
 0x133   :  { %v235_v51 = vpop.f32.mrf.mxu3 }
 0x134   :  { %v466_v35 = vpop.eup %465  ;;  %v236_v54 = vadd.f32 %v693_v24, %v235_v51 }
 0x135   :  { %175 = vmatmul.f32.vlgmr.msrb.gmra.mxu2 %v466_v35 }
 0x136   :  { %313 = vmatpush.bf16.msrb.mxu2 %v545_v3  ;;  %v400_v3 = vld [vmem:[%s838_s4 + $0x78] sm:$0xff] }
 0x137   :  { %405 = vmatpush.msra.mxu1 %v400_v3 }
 0x139   :  { %406 = vmatpush.msra.mxu1 %v399_v4 }
 0x13b   :  { %v237_v52 = vpop.f32.mrf.mxu3 }
 0x13d   :  { %449 = vmatmul.msk.bf16.vlgmr.msra.gmra.mxu2 %vm59_vm0, %v262_v48 }
 0x13e   :  { %319 = vmatpush.msra.mxu2 %v529_v0 }
 0x140   :  { %320 = vmatpush.msra.mxu2 %v534_v1 }
 0x142   :  { %321 = vmatpush.msra.mxu2 %v540_v2 }
 0x144   :  { %322 = vmatpush.msra.mxu2 %v554_v5  ;;  %v398_v5 = vld [vmem:[%s838_s4 + $0x68] sm:$0xff] }
 0x145   :  { %407 = vmatpush.msra.mxu1 %v398_v5 }
 0x146   :  { %323 = vmatpush.msra.mxu2 %v563_v7  ;;  %v396_v7 = vld [vmem:[%s838_s4 + $0x58] sm:$0xff] }
 0x147   :  { %408 = vmatpush.msra.mxu1 %v397_v6 }
 0x148   :  { %324 = vmatpush.msra.mxu2 %v574_v9 }
 0x149   :  { %409 = vmatpush.msra.mxu1 %v396_v7 }
 0x14a   :  { %325 = vmatpush.msra.mxu2 %v583_v10  ;;  %v394_v10 = vld [vmem:[%s838_s4 + $0x48] sm:$0xff] }
 0x14b   :  { %410 = vmatpush.msra.mxu1 %v395_v8 }
 0x14c   :  { %326 = vmatpush.msra.mxu2 %v592_v11  ;;  %v393_v11 = vld [vmem:[%s838_s4 + $0x40] sm:$0xff] }
 0x14d   :  { %450 = vmatmul.msk.bf16.vlgmr.msrb.gmra.mxu2 %vm59_vm0, %v302_v53  ;;  %411 = vmatpush.msra.mxu1 %v394_v10 }
 0x14e   :  { %327 = vmatpush.msra.mxu2 %v600_v12  ;;  %v392_v12 = vld [vmem:[%s838_s4 + $0x38] sm:$0xff] }
 0x14f   :  { %412 = vmatpush.msra.mxu1 %v393_v11 }
 0x150   :  { %328 = vmatpush.msra.mxu2 %v608_v13  ;;  %v391_v13 = vld [vmem:[%s838_s4 + $0x30] sm:$0xff] }
 0x151   :  { %413 = vmatpush.msra.mxu1 %v392_v12 }
 0x152   :  { %329 = vmatpush.msra.mxu2 %v616_v14 }
 0x153   :  { %414 = vmatpush.msra.mxu1 %v391_v13 }
 0x154   :  { %330 = vmatpush.msra.mxu2 %v624_v15  ;;  %v390_v15 = vld [vmem:[%s838_s4 + $0x28] sm:$0xff] }
 0x155   :  { %415 = vmatpush.msra.mxu1 %v390_v15 }
 0x156   :  { %331 = vmatpush.msra.mxu2 %v632_v16 }
 0x157   :  { %416 = vmatpush.msra.mxu1 %v389_v20 }
 0x158   :  { %332 = vmatpush.msra.mxu2 %v640_v17 }
 0x159   :  { %417 = vmatpush.msra.mxu1 %v388_v21 }
 0x15a   :  { %333 = vmatpush.msra.mxu2 %v648_v18 }
 0x15b   :  { %418 = vmatpush.msra.mxu1 %v387_v22 }
 0x15c   :  { %334 = vmatpush.msra.mxu2 %v656_v19 }
 0x15d   :  { %419 = vmatpush.msra.mxu1 %v386_v23 }
 0x15f   :  { %420 = vmatpush.msra.mxu1 %v385_v25 }
 0x1b8   :  { %v176_v40 = vpop.f32.mrf.mxu2 }
 0x1b9   :  { %v179_v41 = vadd.f32 %v176_v40, %v156_v39 }
 0x1bb   :  { %467 = vtanh.f32 %v179_v41 }
 0x1c0   :  { %v275_v55 = vpop.f32.mrf.mxu2 }
 0x1c1   :  { %v468_v42 = vpop.eup %467  ;;  %v276_v62 = vadd.f32 %v693_v24, %v275_v55 }
 0x1c2   :  { %215 = vmatmul.f32.vlgmr.msrb.gmra.mxu1 %v468_v42 }
 0x1c8   :  { %v277_v58 = vpop.f32.mrf.mxu2 }
 0x1d0   :  { %v315_v60 = vpop.f32.mrf.mxu2 }
 0x1d1   :  { %v316_v16 = vadd.f32 %v693_v24, %v315_v60 }
 0x1d8   :  { %v317_v61 = vpop.f32.mrf.mxu2 }
 0x23f   :  { %v216_v47 = vpop.f32.mrf.mxu1 }
 0x240   :  { %v219_v49 = vadd.f32 %v216_v47, %v196_v46 }
 0x242   :  { %469 = vtanh.f32 %v219_v49 }
 0x248   :  { %v470_v50 = vpop.eup %469 }
 0x249   :  { %255 = vmatmul.f32.vlgmr.msra.gmra.mxu0 %v470_v50 }
 0x2c6   :  { %v256_v56 = vpop.f32.mrf.mxu0 }
 0x2c7   :  { %v259_v57 = vadd.f32 %v256_v56, %v236_v54 }
 0x2c9   :  { %471 = vtanh.f32 %v259_v57 }
 0x2cf   :  { %v472_v59 = vpop.eup %471 }
 0x2d0   :  { %295 = vmatmul.f32.vlgmr.msrb.gmra.mxu3 %v472_v59 }
 0x2d8   :  { %451 = vmatmul.msk.bf16.vlgmr.msra.gmra.mxu3 %vm59_vm0, %v342_v63 }
 0x353   :  { %v296_v0 = vpop.f32.mrf.mxu3 }
 0x354   :  { %v299_v1 = vadd.f32 %v296_v0, %v276_v62 }
 0x356   :  { %473 = vtanh.f32 %v299_v1 }
 0x35b   :  { %v355_v9 = vpop.f32.mrf.mxu3 }
 0x35c   :  { %v474_v2 = vpop.eup %473  ;;  %v356_v26 = vadd.f32 %v693_v24, %v355_v9 }
 0x35d   :  { %335 = vmatmul.f32.vlgmr.msra.gmra.mxu2 %v474_v2 }
 0x363   :  { %v357_v14 = vpop.f32.mrf.mxu3 }
 0x3e0   :  { %v336_v17 = vpop.f32.mrf.mxu2 }
 0x3e1   :  { %v339_v18 = vadd.f32 %v336_v17, %v316_v16 }
 0x3e3   :  { %475 = vtanh.f32 %v339_v18 }
 0x3e9   :  { %v476_v19 = vpop.eup %475 }
 0x3ea   :  { %375 = vmatmul.f32.vlgmr.msrb.gmra.mxu0 %v476_v19 }
 0x467   :  { %v376_v27 = vpop.f32.mrf.mxu0 }
 0x468   :  { %v379_v28 = vadd.f32 %v376_v27, %v356_v26 }
 0x46a   :  { %477 = vtanh.f32 %v379_v28 }
 0x470   :  { %v478_v29 = vpop.eup %477 }
 0x471   :  { %421 = vmatmul.f32.vlgmr.msra.gmra.mxu1 %v478_v29 }
 0x4ee   :  { %v422_v31 = vpop.f32.mrf.mxu1 }
 0x4ef   :  { %v423_v32 = vadd.f32 %v462_v30, %v422_v31 }
 0x4f1   :  { %425 = vmax.xlane.f32.xlu1 %v423_v32 }
 0x564   :  { %v426_v33 = vpop.xlane.xlu1 %425 }
 0x565   :  { %v427_v34 = vsub.f32 %v423_v32, %v426_v33 }
 0x567   :  { %v428_v35 = vmul.f32 1.442695, %v427_v34 }
 0x569   :  { %479 = vpow2.f32 %v428_v35 }
 0x56f   :  { %v480_v36 = vpop.eup %479 }
 0x570   :  { %430 = vadd.xlane.f32.xlu2 %v480_v36 }
 0x5e3   :  { %v431_v37 = vpop.xlane.xlu2 %430 }
 0x5e4   :  { %481 = vlog2.f32 %v431_v37 }
 0x5ea   :  { %v482_v24 = vpop.eup %481 }
 0x5eb   :  { %v433_v38 = vmul.f32 0.6931472, %v482_v24 }
 0x5ed   :  { %v434_v39 = vsub.f32 %v427_v34, %v433_v38 }
 0x5ef   :  { %435 = vst [vmem:[%s840_s6] sm:$0xff] %v434_v39 }

</bundles_post_ra>
